<compile_context>
chip_gen: v7x
topology: tpu7x:2x2x1
jax: 0.10.0
libtpu: 0.0.40
codegen_flags: <defaults>
</compile_context>

<pallas_src>
import functools

import jax
import jax.numpy as jnp
from jax import lax
from jax.experimental import pallas as pl
from jax.experimental.pallas import tpu as pltpu

HIDDEN = 64
PACKED = 2 * HIDDEN  # 128 lanes: policy trunk in [0,64), value trunk in [64,128)


def _fused_kernel(x_ref, w1_ref, b1_ref, w2_ref, b2_ref, w3_ref, b3_ref,
                  out_ref, *, ac_dim):
    """One row-tile of the fused policy+value forward.

    x_ref : [tile, ob_dim] bf16
    w*    : packed bf16 weights, b* : packed f32 biases (grid-invariant)
    out   : [tile, 128] bf16 — lanes [0,ac_dim) = softmax(pi), lane ac_dim = v.
    """
    rows = out_ref.shape[0]
    lanes = lax.broadcasted_iota(jnp.int32, (rows, PACKED), 1)
    tanh_lane = lanes < HIDDEN      # policy half uses tanh, value half uses relu
    pi_lane = lanes < ac_dim

    x = x_ref[...]  # bf16

    # Layer 1: [tile, ob_dim] @ [ob_dim, 128]
    z1 = jnp.dot(x, w1_ref[...], preferred_element_type=jnp.float32) + b1_ref[...]
    a1 = jnp.where(tanh_lane, jnp.tanh(z1), jnp.maximum(z1, 0.0))

    # Layer 2: block-diagonal [128, 128]
    z2 = jnp.dot(a1.astype(jnp.bfloat16), w2_ref[...],
                 preferred_element_type=jnp.float32) + b2_ref[...]
    a2 = jnp.where(tanh_lane, jnp.tanh(z2), jnp.maximum(z2, 0.0))

    # Layer 3: both heads packed into one [128, 128] matmul
    z3 = jnp.dot(a2.astype(jnp.bfloat16), w3_ref[...],
                 preferred_element_type=jnp.float32) + b3_ref[...]

    # Masked, numerically-stable softmax over lanes [0, ac_dim).
    # Exact normalization (no approx reciprocal) so rows sum to 1 in f32.
    logits = jnp.where(pi_lane, z3, jnp.float32(-1e30))
    m = jnp.max(logits, axis=-1, keepdims=True)
    e = jnp.where(pi_lane, jnp.exp(logits - m), 0.0)
    pi = e / jnp.sum(e, axis=-1, keepdims=True)

    # Lane-dense bf16 output slab: pi in lanes [0,ac_dim), v in lane ac_dim,
    # zeros elsewhere (pi is exactly 0 outside the pi lanes).
    out_ref[...] = jnp.where(lanes == ac_dim, z3, pi).astype(out_ref.dtype)


def _resident_spec(shape):
    """Grid-invariant operand: same (zero) block index at every grid step."""
    zeros = tuple(0 for _ in shape)
    return pl.BlockSpec(shape, lambda i, _z=zeros: _z)


@functools.partial(jax.jit, static_argnames=("ac_dim", "tile_rows"))
def policy_value_flat(x_flat, packed, ac_dim, tile_rows):
    """x_flat: [N, ob_dim] bf16, N % tile_rows == 0. Returns [N, 128] bf16 slab."""
    n, ob_dim = x_flat.shape
    assert n % tile_rows == 0

    weight_keys = ("w1p", "b1p", "w2p", "b2p", "w3p", "b3p")
    weights = [packed[k] for k in weight_keys]

    in_specs = [pl.BlockSpec((tile_rows, ob_dim), lambda i: (i, 0))]
    in_specs += [_resident_spec(w.shape) for w in weights]
    out_specs = pl.BlockSpec((tile_rows, PACKED), lambda i: (i, 0))

    out = pl.pallas_call(
        functools.partial(_fused_kernel, ac_dim=ac_dim),
        out_shape=jax.ShapeDtypeStruct((n, PACKED), jnp.bfloat16),
        grid_spec=pltpu.PrefetchScalarGridSpec(
            num_scalar_prefetch=0,
            grid=(n // tile_rows,),
            in_specs=in_specs,
            out_specs=out_specs,
        ),
        compiler_params=pltpu.CompilerParams(
            dimension_semantics=("parallel",)),
    )(x_flat, *weights)
    return out


def _choose_tile_rows(n):
    """Row tile: multiple of 16 (bf16 sublane tile), as large as possible up to
    2048 rows — big tiles amortize the ~0.35us per-grid-step overhead while the
    double-buffered bf16 blocks stay ~1 MiB (safe on v5e/v6e/v7x VMEM)."""
    tile = -(-n // 16) * 16          # round n up to a multiple of 16
    return min(2048, tile)


def init_params(key, ob_dim, ac_dim):
    """Unpacked f32 parameters (PyTorch Linear shapes, pre-transposed to x@W+b)."""
    ks = jax.random.split(key, 12)

    def lin(kw, kb, fan_in, fan_out):
        bound = 1.0 / jnp.sqrt(fan_in)
        w = jax.random.uniform(kw, (fan_in, fan_out), jnp.float32, -bound, bound)
        b = jax.random.uniform(kb, (1, fan_out), jnp.float32, -bound, bound)
        return w, b

    w1, b1 = lin(ks[0], ks[1], ob_dim, HIDDEN)
    w2, b2 = lin(ks[2], ks[3], HIDDEN, HIDDEN)
    wpi, bpi = lin(ks[4], ks[5], HIDDEN, ac_dim)
    u1, c1 = lin(ks[6], ks[7], ob_dim, HIDDEN)
    u2, c2 = lin(ks[8], ks[9], HIDDEN, HIDDEN)
    wv, cv = lin(ks[10], ks[11], HIDDEN, 1)
    return dict(w1=w1, b1=b1, w2=w2, b2=b2, wpi=wpi, bpi=bpi,
                u1=u1, c1=c1, u2=u2, c2=c2, wv=wv, cv=cv)


def pack_params(p, ac_dim):
    """Fuse both trunks into 3 packed 128-wide weight matrices (bf16) + 3 f32 biases.
    Done once on the host — the kernel sees only 6 small resident arrays."""
    assert ac_dim + 1 <= PACKED
    w1p = jnp.concatenate([p["w1"], p["u1"]], axis=1)                  # [ob_dim, 128]
    b1p = jnp.concatenate([p["b1"], p["c1"]], axis=1)                  # [1, 128]

    w2p = jnp.zeros((PACKED, PACKED), jnp.float32)
    w2p = w2p.at[:HIDDEN, :HIDDEN].set(p["w2"]).at[HIDDEN:, HIDDEN:].set(p["u2"])
    b2p = jnp.concatenate([p["b2"], p["c2"]], axis=1)

    w3p = jnp.zeros((PACKED, PACKED), jnp.float32)
    w3p = w3p.at[:HIDDEN, :ac_dim].set(p["wpi"])
    w3p = w3p.at[HIDDEN:, ac_dim:ac_dim + 1].set(p["wv"])
    b3p = jnp.zeros((1, PACKED), jnp.float32)
    b3p = b3p.at[:, :ac_dim].set(p["bpi"]).at[:, ac_dim:ac_dim + 1].set(p["cv"])

    return dict(w1p=w1p.astype(jnp.bfloat16), b1p=b1p,
                w2p=w2p.astype(jnp.bfloat16), b2p=b2p,
                w3p=w3p.astype(jnp.bfloat16), b3p=b3p)


def model_forward(observation, prev_action, prev_reward, packed_params, ac_dim):
    """Mirrors ModelCls.forward: leading dims may be [T,B], [B], or []."""
    del prev_action, prev_reward  # unused, as in the PyTorch module
    obs = jnp.asarray(observation).astype(jnp.float32)
    ob_dim = obs.shape[-1]

    # infer_leading_dims with dim=1
    lead_dim = obs.ndim - 1
    if lead_dim == 2:
        T, B = obs.shape[0], obs.shape[1]
    elif lead_dim == 1:
        T, B = 1, obs.shape[0]
    else:
        T, B = 1, 1
    n = T * B

    tile_rows = _choose_tile_rows(n)
    n_pad = -(-n // tile_rows) * tile_rows

    # bf16 activations halve HBM read traffic; matmul accumulation stays f32.
    x_flat = obs.reshape(n, ob_dim).astype(jnp.bfloat16)
    if n_pad != n:
        x_flat = jnp.pad(x_flat, ((0, n_pad - n), (0, 0)))

    out = policy_value_flat(x_flat, packed_params, ac_dim=ac_dim,
                            tile_rows=tile_rows)
    pi = out[:n, :ac_dim].astype(jnp.float32)
    v = out[:n, ac_dim].astype(jnp.float32)

    # restore_leading_dims
    if lead_dim == 2:
        pi = pi.reshape(T, B, ac_dim)
        v = v.reshape(T, B)
    elif lead_dim == 1:
        pi = pi.reshape(B, ac_dim)
        v = v.reshape(B)
    else:
        pi = pi.reshape(ac_dim)
        v = v.reshape(())
    return pi, v


def _reference_forward(observation, params):
    """Pure-JAX f32 reference (unpacked weights) for a numerical check."""
    obs = observation.astype(jnp.float32)
    T, B, ob_dim = obs.shape
    x = obs.reshape(T * B, ob_dim)
    h = jnp.tanh(x @ params["w1"] + params["b1"])
    h = jnp.tanh(h @ params["w2"] + params["b2"])
    pi = jax.nn.softmax(h @ params["wpi"] + params["bpi"], axis=-1)
    g = jax.nn.relu(x @ params["u1"] + params["c1"])
    g = jax.nn.relu(g @ params["u2"] + params["c2"])
    v = (g @ params["wv"] + params["cv"])[:, 0]
    return pi.reshape(T, B, -1), v.reshape(T, B)


if __name__ == "__main__":
    T, B = 2, 8          # 16 rows total
    OB_DIM, AC_DIM = 12, 6

    key = jax.random.PRNGKey(0)
    k_obs, k_params = jax.random.split(key)

    params = init_params(k_params, OB_DIM, AC_DIM)
    packed = pack_params(params, AC_DIM)

    observation = jax.random.normal(k_obs, (T, B, OB_DIM), jnp.float32)
    prev_action = jnp.zeros((T, B), jnp.int32)    # unused by forward
    prev_reward = jnp.zeros((T, B), jnp.float32)  # unused by forward

    pi, v = model_forward(observation, prev_action, prev_reward, packed, AC_DIM)
    pi, v = jax.block_until_ready((pi, v))

    assert pi.shape == (T, B, AC_DIM) and v.shape == (T, B)

    # f32 reference; tolerance accounts for bf16 matmul operands + bf16 output slab.
    pi_ref, v_ref = _reference_forward(observation, params)
    assert jnp.allclose(pi, pi_ref, atol=2e-2, rtol=2e-2), "pi mismatch"
    assert jnp.allclose(v, v_ref, atol=2e-2, rtol=2e-2), "v mismatch"
    # Softmax is exactly normalized in f32 inside the kernel; residual error is
    # only the bf16 rounding of the output slab (<~2e-3 per row-sum).
    assert jnp.allclose(jnp.sum(pi, axis=-1), 1.0, atol=5e-3), "softmax norm"

    # [B]-leading-dim path sanity check.
    pi_b, v_b = model_forward(observation[0], prev_action[0], prev_reward[0],
                              packed, AC_DIM)
    pi_b, v_b = jax.block_until_ready((pi_b, v_b))
    assert pi_b.shape == (B, AC_DIM) and v_b.shape == (B,)
    assert jnp.allclose(pi_b, pi_ref[0], atol=2e-2, rtol=2e-2)

    print("KERNEL_OK")
</pallas_src>

<mosaic_0001>
module attributes {stable_mosaic.version = 11 : i64} {
  func.func @_fused_kernel(%arg0: i32, %arg1: memref<16x12xbf16, #tpu.memory_space<vmem>>, %arg2: memref<12x128xbf16, #tpu.memory_space<vmem>>, %arg3: memref<1x128xf32, #tpu.memory_space<vmem>>, %arg4: memref<128x128xbf16, #tpu.memory_space<vmem>>, %arg5: memref<1x128xf32, #tpu.memory_space<vmem>>, %arg6: memref<128x128xbf16, #tpu.memory_space<vmem>>, %arg7: memref<1x128xf32, #tpu.memory_space<vmem>>, %arg8: memref<16x128xbf16, #tpu.memory_space<vmem>>) attributes {dimension_semantics = [#tpu.dimension_semantics<parallel>], iteration_bounds = array<i64: 1>, scalar_prefetch = 0 : i64, scratch_operands = 0 : i64, tpu.core_type = #tpu.core_type<tc>, window_params = [{transform_indices = @transform_0, window_bounds = array<i64: 16, 12>}, {pipeline_mode = #tpu.pipeline_mode<synchronous>, transform_indices = @transform_1, window_bounds = array<i64: 12, 128>}, {pipeline_mode = #tpu.pipeline_mode<synchronous>, transform_indices = @transform_2, window_bounds = array<i64: 1, 128>}, {pipeline_mode = #tpu.pipeline_mode<synchronous>, transform_indices = @transform_3, window_bounds = array<i64: 128, 128>}, {pipeline_mode = #tpu.pipeline_mode<synchronous>, transform_indices = @transform_4, window_bounds = array<i64: 1, 128>}, {pipeline_mode = #tpu.pipeline_mode<synchronous>, transform_indices = @transform_5, window_bounds = array<i64: 128, 128>}, {pipeline_mode = #tpu.pipeline_mode<synchronous>, transform_indices = @transform_6, window_bounds = array<i64: 1, 128>}, {transform_indices = @transform_7, window_bounds = array<i64: 16, 128>}]} {
    %0 = tpu.iota {dimensions = array<i32: 1>} : vector<16x128xi32>
    %c64_i32 = arith.constant 64 : i32
    %1 = vector.broadcast %c64_i32 : i32 to vector<16x128xi32>
    %2 = arith.cmpi slt, %0, %1 : vector<16x128xi32>
    %c6_i32 = arith.constant 6 : i32
    %3 = vector.broadcast %c6_i32 : i32 to vector<16x128xi32>
    %4 = arith.cmpi slt, %0, %3 : vector<16x128xi32>
    %c0 = arith.constant 0 : index
    %c0_0 = arith.constant 0 : index
    %5 = vector.load %arg1[%c0, %c0_0] : memref<16x12xbf16, #tpu.memory_space<vmem>>, vector<16x12xbf16>
    %c0_1 = arith.constant 0 : index
    %c0_2 = arith.constant 0 : index
    %6 = vector.load %arg2[%c0_1, %c0_2] : memref<12x128xbf16, #tpu.memory_space<vmem>>, vector<12x128xbf16>
    %cst = arith.constant dense<0.000000e+00> : vector<16x128xf32>
    %7 = tpu.matmul %5, %6, %cst {dimension_numbers = #tpu.dot_dimension_numbers<[1], [0], [0], [1], [0, 0, 1, 1], [], []>} : vector<16x12xbf16>, vector<12x128xbf16>, vector<16x128xf32> -> vector<16x128xf32>
    %c0_3 = arith.constant 0 : index
    %c0_4 = arith.constant 0 : index
    %8 = vector.load %arg3[%c0_3, %c0_4] : memref<1x128xf32, #tpu.memory_space<vmem>>, vector<1x128xf32>
    %9 = vector.broadcast %8 : vector<1x128xf32> to vector<16x128xf32>
    %10 = arith.addf %7, %9 : vector<16x128xf32>
    %11 = math.tanh %10 : vector<16x128xf32>
    %cst_5 = arith.constant 0.000000e+00 : f32
    %12 = vector.broadcast %cst_5 : f32 to vector<16x128xf32>
    %13 = arith.maximumf %10, %12 : vector<16x128xf32>
    %14 = arith.select %2, %11, %13 : vector<16x128xi1>, vector<16x128xf32>
    %15 = arith.truncf %14 : vector<16x128xf32> to vector<16x128xbf16>
    %c0_6 = arith.constant 0 : index
    %c0_7 = arith.constant 0 : index
    %16 = vector.load %arg4[%c0_6, %c0_7] : memref<128x128xbf16, #tpu.memory_space<vmem>>, vector<128x128xbf16>
    %cst_8 = arith.constant dense<0.000000e+00> : vector<16x128xf32>
    %17 = tpu.matmul %15, %16, %cst_8 {dimension_numbers = #tpu.dot_dimension_numbers<[1], [0], [0], [1], [0, 0, 1, 1], [], []>} : vector<16x128xbf16>, vector<128x128xbf16>, vector<16x128xf32> -> vector<16x128xf32>
    %c0_9 = arith.constant 0 : index
    %c0_10 = arith.constant 0 : index
    %18 = vector.load %arg5[%c0_9, %c0_10] : memref<1x128xf32, #tpu.memory_space<vmem>>, vector<1x128xf32>
    %19 = vector.broadcast %18 : vector<1x128xf32> to vector<16x128xf32>
    %20 = arith.addf %17, %19 : vector<16x128xf32>
    %21 = math.tanh %20 : vector<16x128xf32>
    %cst_11 = arith.constant 0.000000e+00 : f32
    %22 = vector.broadcast %cst_11 : f32 to vector<16x128xf32>
    %23 = arith.maximumf %20, %22 : vector<16x128xf32>
    %24 = arith.select %2, %21, %23 : vector<16x128xi1>, vector<16x128xf32>
    %25 = arith.truncf %24 : vector<16x128xf32> to vector<16x128xbf16>
    %c0_12 = arith.constant 0 : index
    %c0_13 = arith.constant 0 : index
    %26 = vector.load %arg6[%c0_12, %c0_13] : memref<128x128xbf16, #tpu.memory_space<vmem>>, vector<128x128xbf16>
    %cst_14 = arith.constant dense<0.000000e+00> : vector<16x128xf32>
    %27 = tpu.matmul %25, %26, %cst_14 {dimension_numbers = #tpu.dot_dimension_numbers<[1], [0], [0], [1], [0, 0, 1, 1], [], []>} : vector<16x128xbf16>, vector<128x128xbf16>, vector<16x128xf32> -> vector<16x128xf32>
    %c0_15 = arith.constant 0 : index
    %c0_16 = arith.constant 0 : index
    %28 = vector.load %arg7[%c0_15, %c0_16] : memref<1x128xf32, #tpu.memory_space<vmem>>, vector<1x128xf32>
    %29 = vector.broadcast %28 : vector<1x128xf32> to vector<16x128xf32>
    %30 = arith.addf %27, %29 : vector<16x128xf32>
    %cst_17 = arith.constant -1.000000e+30 : f32
    %31 = vector.broadcast %cst_17 : f32 to vector<16x128xf32>
    %32 = arith.select %4, %30, %31 : vector<16x128xi1>, vector<16x128xf32>
    %cst_18 = arith.constant dense<0xFF800000> : vector<16xf32>
    %33 = vector.multi_reduction <maximumf>, %32, %cst_18 [1] : vector<16x128xf32> to vector<16xf32>
    %34 = vector.shape_cast %33 : vector<16xf32> to vector<16x1xf32>
    %35 = vector.broadcast %34 : vector<16x1xf32> to vector<16x128xf32>
    %36 = arith.subf %32, %35 : vector<16x128xf32>
    %37 = math.exp %36 : vector<16x128xf32>
    %cst_19 = arith.constant 0.000000e+00 : f32
    %38 = vector.broadcast %cst_19 : f32 to vector<16x128xf32>
    %39 = arith.select %4, %37, %38 : vector<16x128xi1>, vector<16x128xf32>
    %cst_20 = arith.constant dense<0.000000e+00> : vector<16xf32>
    %40 = vector.multi_reduction <add>, %39, %cst_20 [1] : vector<16x128xf32> to vector<16xf32>
    %41 = vector.shape_cast %40 : vector<16xf32> to vector<16x1xf32>
    %42 = vector.broadcast %41 : vector<16x1xf32> to vector<16x128xf32>
    %43 = arith.divf %39, %42 : vector<16x128xf32>
    %c6_i32_21 = arith.constant 6 : i32
    %44 = vector.broadcast %c6_i32_21 : i32 to vector<16x128xi32>
    %45 = arith.cmpi eq, %0, %44 : vector<16x128xi32>
    %46 = arith.select %45, %30, %43 : vector<16x128xi1>, vector<16x128xf32>
    %47 = arith.truncf %46 : vector<16x128xf32> to vector<16x128xbf16>
    %c0_22 = arith.constant 0 : index
    %c0_23 = arith.constant 0 : index
    %48 = vector.load %arg8[%c0_22, %c0_23] : memref<16x128xbf16, #tpu.memory_space<vmem>>, vector<16x128xbf16>
    tpu.vector_store %arg8[%c0_22, %c0_23], %47 {strides = array<i32>} : memref<16x128xbf16, #tpu.memory_space<vmem>>, vector<16x128xbf16>,
    return
  }
  func.func @transform_0(%arg0: i32) -> (i32, i32) {
    %c0_i32 = arith.constant 0 : i32
    %c0_i32_0 = arith.constant 0 : i32
    return %arg0, %c0_i32 : i32, i32
  }
  func.func @transform_1(%arg0: i32) -> (i32, i32) {
    %c0_i32 = arith.constant 0 : i32
    %c0_i32_0 = arith.constant 0 : i32
    %c0_i32_1 = arith.constant 0 : i32
    return %c0_i32, %c0_i32_0 : i32, i32
  }
  func.func @transform_2(%arg0: i32) -> (i32, i32) {
    %c0_i32 = arith.constant 0 : i32
    %c0_i32_0 = arith.constant 0 : i32
    %c0_i32_1 = arith.constant 0 : i32
    return %c0_i32, %c0_i32_0 : i32, i32
  }
  func.func @transform_3(%arg0: i32) -> (i32, i32) {
    %c0_i32 = arith.constant 0 : i32
    %c0_i32_0 = arith.constant 0 : i32
    %c0_i32_1 = arith.constant 0 : i32
    return %c0_i32, %c0_i32_0 : i32, i32
  }
  func.func @transform_4(%arg0: i32) -> (i32, i32) {
    %c0_i32 = arith.constant 0 : i32
    %c0_i32_0 = arith.constant 0 : i32
    %c0_i32_1 = arith.constant 0 : i32
    return %c0_i32, %c0_i32_0 : i32, i32
  }
  func.func @transform_5(%arg0: i32) -> (i32, i32) {
    %c0_i32 = arith.constant 0 : i32
    %c0_i32_0 = arith.constant 0 : i32
    %c0_i32_1 = arith.constant 0 : i32
    return %c0_i32, %c0_i32_0 : i32, i32
  }
  func.func @transform_6(%arg0: i32) -> (i32, i32) {
    %c0_i32 = arith.constant 0 : i32
    %c0_i32_0 = arith.constant 0 : i32
    %c0_i32_1 = arith.constant 0 : i32
    return %c0_i32, %c0_i32_0 : i32, i32
  }
  func.func @transform_7(%arg0: i32) -> (i32, i32) {
    %c0_i32 = arith.constant 0 : i32
    %c0_i32_0 = arith.constant 0 : i32
    return %arg0, %c0_i32 : i32, i32
  }
}

</mosaic_0001>

<bundles_post_ra>
// kernel: policy_value_flat.1
= control target key start
LH: loop header
LB: loop body
LE: loop exit
PB: predicated region body
PF: predicated region fallthrough
CT: control target
= control target key end

     0   :  { %12 = vsyncpa [#allocation3], 0  ;;  %s838_s0 = inlined_call_operand.hbm [shape: bf16[16,12], index: 0, kind: input, shape index: {}]   ;;  %s839_s1 = inlined_call_operand.vmem [shape: bf16[12,128], index: 1, kind: input, shape index: {}]   ;;  %s840_s2 = inlined_call_operand.vmem [shape: f32[1,128], index: 2, kind: input, shape index: {}]   ;;  %s841_s3 = inlined_call_operand.hbm [shape: bf16[128,128], index: 3, kind: input, shape index: {}]   ;;  %s842_s4 = inlined_call_operand.vmem [shape: f32[1,128], index: 4, kind: input, shape index: {}]   ;;  %s843_s5 = inlined_call_operand.hbm [shape: bf16[128,128], index: 5, kind: input, shape index: {}]   ;;  %s844_s6 = inlined_call_operand.vmem [shape: f32[1,128], index: 6, kind: input, shape index: {}]   ;;  %s845_s7 = inlined_call_operand.hbm [shape: bf16[16,128], index: 7, kind: output, shape index: {}]  }
   0x1   :  { %13 = vsyncpa [#allocation6], 0 }
   0x2   :  { %14 = vsyncpa [#allocation4], 0  ;;  %s667_s24 = smov [#allocation5]   ;;  %s668_s26 = smov [#allocation2]  }
   0x3   :  { %s36_s25 = sshll.u32 %s667_s24, 4  ;;  %s20_s27 = sshll.u32 %s668_s26, 4  ;;  %s37_s25 = int_to_ptr.vmem [resolvable:$true] %s36_s25  ;;  %s715_s27 = int_to_ptr.vmem [resolvable:$true] %s20_s27 }
   0x4   :  { %s573_s30 = scalar_lea.hbm %s841_s3, 1024 }
   0x5   :  { %p574_p0 = scmp.ne.s32.totalorder %s841_s3, %s573_s30  ;;  %p577_p1 = scmp.lt.u32.totalorder %s573_s30, %s841_s3 }
   0x7   :  { %p579_p2 = pnand %p577_p1, %p574_p0 }
   0x9   :  { %582 = shalt.err (!%p579_p2)
}
   0xa   :  { %s583_s12 = scalar_lea.vmem %s37_s25, 1024  ;;  %p588_p4 = scmp.lt.s32.totalorder %s37_s25, %s37_s25 }
   0xb   :  { %p584_p3 = scmp.ne.s32.totalorder %s37_s25, %s583_s12  ;;  %p589_p5 = scmp.lt.s32.totalorder %s583_s12, %s583_s12 }
   0xd   :  { %p590_p6 = por %p589_p5, %p588_p4 }
   0xf   :  { %p591_p7 = pnand %p590_p6, %p584_p3 }
  0x11   :  { %594 = shalt.err (!%p591_p7)
}
  0x12   :  { %s669_s13 = smov 64   ;;  %s670_s14 = smov 4  }
  0x13   :  { %42 = dma.hbm_to_vmem [thread:$0]  %s841_s3, 1024, %s37_s25, [#allocation6], %s669_s13, %s669_s13, %s670_s14  }
  0x14   :  { %s595_s19 = scalar_lea.hbm %s838_s0, 128 }
  0x15   :  { %p596_p8 = scmp.ne.s32.totalorder %s838_s0, %s595_s19  ;;  %p599_p9 = scmp.lt.u32.totalorder %s595_s19, %s838_s0 }
  0x17   :  { %p601_p10 = pnand %p599_p9, %p596_p8 }
  0x19   :  { %604 = shalt.err (!%p601_p10)
}
  0x1a   :  { %s605_s24 = scalar_lea.vmem %s715_s27, 128  ;;  %p610_p12 = scmp.lt.s32.totalorder %s715_s27, %s715_s27 }
  0x1b   :  { %p606_p11 = scmp.ne.s32.totalorder %s715_s27, %s605_s24  ;;  %p611_p13 = scmp.lt.s32.totalorder %s605_s24, %s605_s24 }
  0x1d   :  { %p612_p0 = por %p611_p13, %p610_p12 }
  0x1f   :  { %p613_p1 = pnand %p612_p0, %p606_p11 }
  0x21   :  { %616 = shalt.err (!%p613_p1)
}
  0x22   :  { %26 = dma.hbm_to_vmem [thread:$0]  %s838_s0, 128, %s715_s27, [#allocation3], %s669_s13, %s669_s13, %s670_s14  }
  0x23   :  { %s671_s26 = smov [#allocation7]   ;;  %s617_s8 = scalar_lea.hbm %s843_s5, 1024 }
  0x24   :  { %s50_s28 = sshll.u32 %s671_s26, 4  ;;  %p618_p2 = scmp.ne.s32.totalorder %s843_s5, %s617_s8  ;;  %s51_s28 = int_to_ptr.vmem [resolvable:$true] %s50_s28 }
  0x25   :  { %p621_p3 = scmp.lt.u32.totalorder %s617_s8, %s843_s5 }
  0x27   :  { %p623_p4 = pnand %p621_p3, %p618_p2 }
  0x29   :  { %626 = shalt.err (!%p623_p4)
}
  0x2a   :  { %s627_s15 = scalar_lea.vmem %s51_s28, 1024  ;;  %p632_p6 = scmp.lt.s32.totalorder %s51_s28, %s51_s28 }
  0x2b   :  { %p628_p5 = scmp.ne.s32.totalorder %s51_s28, %s627_s15  ;;  %p633_p7 = scmp.lt.s32.totalorder %s627_s15, %s627_s15 }
  0x2d   :  { %p634_p8 = por %p633_p7, %p632_p6 }
  0x2f   :  { %p635_p9 = pnand %p634_p8, %p628_p5 }
  0x31   :  { %638 = shalt.err (!%p635_p9)
}
  0x32   :  { %56 = dma.hbm_to_vmem [thread:$0]  %s843_s5, 1024, %s51_s28, [#allocation6], %s669_s13, %s669_s13, %s670_s14  }
  0x33   :  { %661 = dma.done.wait [#allocation3], 128  }
  0x34   :  { %662 = vsyncadd [#allocation3], 4294967168 }
  0x35   :  { %663 = dma.done.wait [#allocation6], 2048  }
  0x36   :  { %664 = vsyncadd [#allocation6], 4294965248  ;;  %v672_v0 = vmov 0.0   ;;  %vm673_vm0 = vmmov 0   ;;  %vm98_vm1 = vcmask 1045504   ;;  %v540_v2 = vld [vmem:[#allocation2] sm:$0xff]   ;;  %v69_v22 = vlaneseq }
  0x37   :  { %485 = vmatprep.subr.bf16.mxu0 %v672_v0  ;;  %487 = vmatprep.mubr.msk.bf16.mxu0 %vm673_vm0, %v672_v0  ;;  %v539_v1 = vld [vmem:[%s839_s1] sm:$0x3f]   ;;  %v541_v4 = vld [vmem:[#allocation5] sm:$0xff]   ;;  %vm94_vm2 = vcmask 97280   ;;  %v542_v5 = vld [vmem:[#allocation5 + $0x8] sm:$0xff]  }
  0x38   :  { %491 = vmatprep.subr.bf16.mxu1 %v672_v0  ;;  %507 = vmatprep.mubr.msk.bf16.mxu1 %vm673_vm0, %v672_v0  ;;  %v100_v3 = vsel %vm98_vm1, %v539_v1, 0  ;;  %v543_v6 = vld [vmem:[#allocation5 + $0x10] sm:$0xff]   ;;  %v544_v7 = vld [vmem:[#allocation5 + $0x18] sm:$0xff]   ;;  %v545_v8 = vld [vmem:[#allocation5 + $0x20] sm:$0xff]   ;;  %v792_v23 = vand.u32 127, %v69_v22 }
  0x39   :  { %486 = vmatpush3.bf16.msra.mxu0 %v100_v3  ;;  %492 = vmatpush3.bf16.msra.mxu1 %v541_v4  ;;  %v546_v9 = vld [vmem:[#allocation5 + $0x28] sm:$0xff]   ;;  %v547_v10 = vld [vmem:[#allocation5 + $0x30] sm:$0xff]   ;;  %v548_v11 = vld [vmem:[#allocation5 + $0x38] sm:$0xff]  }
  0x3a   :  { %511 = vmatprep.subr.bf16.mxu0 %v672_v0  ;;  %493 = vmatprep.subr.bf16.mxu1 %v672_v0  ;;  %v549_v12 = vld [vmem:[#allocation7] sm:$0xff]   ;;  %v550_v13 = vld [vmem:[#allocation7 + $0x8] sm:$0xff]   ;;  %v551_v14 = vld [vmem:[#allocation7 + $0x10] sm:$0xff]   ;;  %vm71_vm3 = vcmp.lt.s32.totalorder %v792_v23, 64  ;;  %vm72_vm4 = vcmp.lt.s32.totalorder %v792_v23, 6  ;;  %vm403_vm5 = vcmp.eq.s32.totalorder %v792_v23, 6 }
  0x3b   :  { %v434_v15 = vld [vmem:[%s840_s2] ss:$0 sm:$0xff]  ;;  %v553_v32 = vld [vmem:[#allocation7 + $0x20] sm:$0xff]   ;;  %v554_v33 = vld [vmem:[#allocation7 + $0x28] sm:$0xff]  }
  0x3c   :  { %488 = vmatmul.mubr.msk.bf16.vlgmr.msra.gmra.mrb[0].mxu0 %vm94_vm2, %v540_v2  ;;  %v552_v31 = vld [vmem:[#allocation7 + $0x18] sm:$0xff]   ;;  %v555_v34 = vld [vmem:[#allocation7 + $0x30] sm:$0xff]  }
  0x3d   :  { %527 = vmatprep.mubr.msk.bf16.mxu0 %vm673_vm0, %v672_v0  ;;  %494 = vmatpush3.bf16.msra.mxu1 %v542_v5  ;;  %v556_v35 = vld [vmem:[#allocation7 + $0x38] sm:$0xff]  }
  0x3e   :  { %495 = vmatprep.subr.bf16.mxu1 %v672_v0  ;;  %512 = vmatpush3.bf16.msra.mxu0 %v549_v12  ;;  %v438_v36 = vld [vmem:[%s842_s4] ss:$0 sm:$0xff] }
  0x3f   :  { %513 = vmatprep.subr.bf16.mxu0 %v672_v0  ;;  %v447_v50 = vld [vmem:[%s844_s6] ss:$0 sm:$0xff]  ;;  %s674_s6 = smov [#allocation8]  }
  0x40   :  { %s421_s20 = sshll.u32 %s674_s6, 4  ;;  %s422_s20 = int_to_ptr.vmem [resolvable:$true] %s421_s20 }
  0x41   :  { %496 = vmatpush3.bf16.msra.mxu1 %v543_v6  ;;  %s639_s21 = scalar_lea.vmem %s422_s20, 128  ;;  %p644_p11 = scmp.lt.s32.totalorder %s422_s20, %s422_s20 }
  0x42   :  { %497 = vmatprep.subr.bf16.mxu1 %v672_v0  ;;  %514 = vmatpush3.bf16.msra.mxu0 %v550_v13  ;;  %p640_p10 = scmp.ne.s32.totalorder %s422_s20, %s639_s21  ;;  %p645_p12 = scmp.lt.s32.totalorder %s639_s21, %s639_s21 }
  0x43   :  { %515 = vmatprep.subr.bf16.mxu0 %v672_v0 }
  0x44   :  { %p646_p13 = por %p645_p12, %p644_p11 }
  0x45   :  { %498 = vmatpush3.bf16.msra.mxu1 %v544_v7 }
  0x46   :  { %499 = vmatprep.subr.bf16.mxu1 %v672_v0  ;;  %516 = vmatpush3.bf16.msra.mxu0 %v551_v14  ;;  %p647_p0 = pnand %p646_p13, %p640_p10 }
  0x47   :  { %517 = vmatprep.subr.bf16.mxu0 %v672_v0 }
  0x49   :  { %500 = vmatpush3.bf16.msra.mxu1 %v545_v8 }
  0x4a   :  { %501 = vmatprep.subr.bf16.mxu1 %v672_v0  ;;  %518 = vmatpush3.bf16.msra.mxu0 %v552_v31 }
  0x4b   :  { %519 = vmatprep.subr.bf16.mxu0 %v672_v0 }
  0x4d   :  { %502 = vmatpush3.bf16.msra.mxu1 %v546_v9 }
  0x4e   :  { %503 = vmatprep.subr.bf16.mxu1 %v672_v0  ;;  %520 = vmatpush3.bf16.msra.mxu0 %v553_v32 }
  0x4f   :  { %521 = vmatprep.subr.bf16.mxu0 %v672_v0 }
  0x51   :  { %504 = vmatpush3.bf16.msra.mxu1 %v547_v10 }
  0x52   :  { %505 = vmatprep.subr.bf16.mxu1 %v672_v0  ;;  %522 = vmatpush3.bf16.msra.mxu0 %v554_v33 }
  0x53   :  { %523 = vmatprep.subr.bf16.mxu0 %v672_v0 }
  0x55   :  { %506 = vmatpush3.bf16.msra.mxu1 %v548_v11 }
  0x56   :  { %524 = vmatpush3.bf16.msra.mxu0 %v555_v34 }
  0x57   :  { %525 = vmatprep.subr.bf16.mxu0 %v672_v0 }
  0x5a   :  { %526 = vmatpush3.bf16.msra.mxu0 %v556_v35 }
 0x10f   :  { %v136_v16 = vpop.f32.mrb[0].mxu0 }
 0x110   :  { %v137_v17 = vadd.f32 %v434_v15, %v136_v16  ;;  %v489_v18 = vpop.f32.mrb[1].mxu0 }
 0x111   :  { %v139_v19 = vpop.f32.mrb[2].mxu0 }
 0x112   :  { %557 = vtanh.f32 %v137_v17  ;;  %v140_v20 = vadd.f32 %v434_v15, %v139_v19  ;;  %v490_v21 = vpop.f32.mrb[3].mxu0  ;;  %v145_v25 = vmax.f32 %v137_v17, 0.0 }
 0x114   :  { %559 = vtanh.f32 %v140_v20  ;;  %v146_v26 = vmax.f32 %v140_v20, 0.0 }
 0x11c   :  { %v558_v24 = vpop.eup %557 }
 0x11d   :  { %v147_v28 = vsel %vm71_vm3, %v558_v24, %v145_v25 }
 0x11e   :  { %v560_v27 = vpop.eup %559 }
 0x11f   :  { %v148_v29 = vsel %vm71_vm3, %v560_v27, %v146_v26 }
 0x120   :  { %v149_v30 = vpack.c.bf16 %v148_v29, %v147_v28 }
 0x122   :  { %508 = vmatmul.mubr.bf16.vlgmr.msra.gmra.mrb[0].mxu1 %v149_v30 }
 0x1f5   :  { %v255_v37 = vpop.f32.mrb[0].mxu1 }
 0x1f6   :  { %v256_v38 = vadd.f32 %v438_v36, %v255_v37  ;;  %v509_v39 = vpop.f32.mrb[1].mxu1 }
 0x1f7   :  { %v258_v40 = vpop.f32.mrb[2].mxu1 }
 0x1f8   :  { %561 = vtanh.f32 %v256_v38  ;;  %v259_v41 = vadd.f32 %v438_v36, %v258_v40  ;;  %v510_v42 = vpop.f32.mrb[3].mxu1  ;;  %v264_v44 = vmax.f32 %v256_v38, 0.0 }
 0x1fa   :  { %563 = vtanh.f32 %v259_v41  ;;  %v265_v45 = vmax.f32 %v259_v41, 0.0 }
 0x202   :  { %v562_v43 = vpop.eup %561 }
 0x203   :  { %v266_v47 = vsel %vm71_vm3, %v562_v43, %v264_v44 }
 0x204   :  { %v564_v46 = vpop.eup %563 }
 0x205   :  { %v267_v48 = vsel %vm71_vm3, %v564_v46, %v265_v45 }
 0x206   :  { %v268_v49 = vpack.c.bf16 %v267_v48, %v266_v47 }
 0x208   :  { %528 = vmatmul.mubr.bf16.vlgmr.msra.gmra.mrb[4].mxu0 %v268_v49 }
 0x2db   :  { %v374_v51 = vpop.f32.mrb[4].mxu0 }
 0x2dc   :  { %v375_v52 = vadd.f32 %v447_v50, %v374_v51  ;;  %v529_v53 = vpop.f32.mrb[5].mxu0 }
 0x2dd   :  { %v377_v54 = vpop.f32.mrb[6].mxu0 }
 0x2de   :  { %v378_v55 = vadd.f32 %v447_v50, %v377_v54  ;;  %v530_v56 = vpop.f32.mrb[7].mxu0  ;;  %v381_v57 = vsel %vm72_vm4, %v375_v52, -1e+30 }
 0x2df   :  { %383 = vmax.xlane.f32.xlu0 %v381_v57 }
 0x2e0   :  { %v382_v58 = vsel %vm72_vm4, %v378_v55, -1e+30 }
 0x2e3   :  { %385 = vmax.xlane.f32.xlu0 %v382_v58 }
 0x36c   :  { %v384_v59 = vpop.xlane.xlu0 %383 }
 0x36d   :  { %v387_v60 = vsub.f32 %v381_v57, %v384_v59 }
 0x36f   :  { %v389_v61 = vmul.f32 1.442695, %v387_v60 }
 0x370   :  { %v386_v62 = vpop.xlane.xlu0 %385 }
 0x371   :  { %565 = vpow2.f32 %v389_v61  ;;  %v388_v63 = vsub.f32 %v382_v58, %v386_v62 }
 0x373   :  { %v391_v0 = vmul.f32 1.442695, %v388_v63 }
 0x375   :  { %567 = vpow2.f32 %v391_v0 }
 0x37b   :  { %v566_v1 = vpop.eup %565 }
 0x37c   :  { %v393_v2 = vsel %vm72_vm4, %v566_v1, 0.0 }
 0x37d   :  { %395 = vadd.xlane.f32.xlu1 %v393_v2 }
 0x37f   :  { %v568_v3 = vpop.eup %567 }
 0x380   :  { %v394_v4 = vsel %vm72_vm4, %v568_v3, 0.0 }
 0x381   :  { %397 = vadd.xlane.f32.xlu1 %v394_v4 }
 0x40a   :  { %v396_v5 = vpop.xlane.xlu1 %395 }
 0x40b   :  { %569 = vrcp.f32 %v396_v5 }
 0x40e   :  { %v398_v6 = vpop.xlane.xlu1 %397 }
 0x40f   :  { %571 = vrcp.f32 %v398_v6 }
 0x415   :  { %v570_v7 = vpop.eup %569 }
 0x416   :  { %v400_v8 = vmul.f32 %v570_v7, %v393_v2 }
 0x418   :  { %v404_v11 = vsel %vm403_vm5, %v375_v52, %v400_v8 }
 0x419   :  { %v572_v9 = vpop.eup %571 }
 0x41a   :  { %v402_v10 = vmul.f32 %v572_v9, %v394_v4 }
 0x41c   :  { %v405_v12 = vsel %vm403_vm5, %v378_v55, %v402_v10 }
 0x41d   :  { %v463_v13 = vpack.c.bf16 %v405_v12, %v404_v11 }
 0x41f   :  { %464 = vst [vmem:[#allocation8] sm:$0xff] %v463_v13  }
 0x420   :  { %650 = shalt.err (!%p647_p0)
}
 0x421   :  { %s651_s24 = scalar_lea.hbm %s845_s7, 128 }
 0x422   :  { %p652_p1 = scmp.ne.s32.totalorder %s845_s7, %s651_s24  ;;  %p655_p2 = scmp.lt.u32.totalorder %s651_s24, %s845_s7 }
 0x424   :  { %p657_p3 = pnand %p655_p2, %p652_p1 }
 0x426   :  { %660 = shalt.err (!%p657_p3)
}
 0x427   :  { %427 = dma.vmem_to_hbm [thread:$0]  %s422_s20, 128, %s845_s7, [#allocation4], %s669_s13, %s669_s13, %s670_s14  }
 0x428   :  { %665 = dma.done.wait [#allocation4], 128  }
 0x429   :  { %666 = vsyncadd [#allocation4], 4294967168 }
 0x42a   :  { %431 = vsyncpa [#allocation3], 1 }
 0x42b   :  { %432 = vsyncpa [#allocation6], 1 }
 0x42c   :  { %433 = vsyncpa [#allocation4], 1 }

</bundles_post_ra>
